<compile_context>
chip_gen: v7x
topology: tpu7x:2x2x1
jax: 0.10.0
libtpu: 0.0.40
codegen_flags: <defaults>
</compile_context>

<pallas_src>
import functools
import math

import jax
import jax.numpy as jnp
from jax.experimental import pallas as pl
from jax.experimental.pallas import tpu as pltpu


# ------------------------------- kernel --------------------------------------
def _glu_kernel(a_ref, g_ref, o_ref):
    # a_ref / g_ref / o_ref: (C, TN) tiles (batch & half dims squeezed away).
    a = a_ref[...].astype(jnp.float32)
    g = g_ref[...].astype(jnp.float32)
    o_ref[...] = (a * jax.nn.sigmoid(g)).astype(o_ref.dtype)


# ------------------------------ tile sizing -----------------------------------
def _pick_tile_n(n, c, itemsize, vmem_budget_bytes, cap=None):
    """Largest spatial tile (multiple of 128 when tiling) within the VMEM budget."""
    # Six blocks live per grid step: a, g, out, each double-buffered.
    max_tn = max(128, vmem_budget_bytes // (6 * max(c, 1) * itemsize))
    if cap is not None:
        max_tn = min(max_tn, cap)
    if n <= max_tn:
        return n                       # whole row fits -> block dim == full dim
    tn = max((max_tn // 128) * 128, 128)
    for t in range(tn, 127, -128):     # prefer an evenly-dividing tile
        if n % t == 0:
            return t
    return tn                          # partial last block handled by Pallas masking


# ------------------------------- wrapper --------------------------------------
def glu(x, *, tile_n=None, vmem_budget_bytes=4 * 1024 * 1024):
    """PyTorch GLU: x[:, :C] * sigmoid(x[:, C:]) for x of shape (B, 2C, *spatial)."""
    assert x.ndim >= 2, "GLU expects at least (batch, channels)"
    b, c2 = x.shape[0], x.shape[1]
    assert c2 % 2 == 0, "channels dont divide 2!"
    c = c2 // 2
    spatial = x.shape[2:]
    n = int(math.prod(spatial)) if spatial else 1

    # Free (contiguous split/merge) reshape: (B, 2C, *spatial) -> (B, 2, C, N).
    xr = x.reshape(b, 2, c, n)

    itemsize = jnp.dtype(x.dtype).itemsize
    tn = _pick_tile_n(n, c, itemsize, vmem_budget_bytes, cap=tile_n)
    grid = (b, pl.cdiv(n, tn))

    def half_spec(h):
        # Select channel-half `h` of the same input array; no sliced HBM copy.
        return pl.BlockSpec((None, None, c, tn),
                            lambda bi, ni, _h=h: (bi, _h, 0, ni))

    out = pl.pallas_call(
        _glu_kernel,
        out_shape=jax.ShapeDtypeStruct((b, c, n), x.dtype),
        grid=grid,
        in_specs=[half_spec(0), half_spec(1)],
        out_specs=pl.BlockSpec((None, c, tn), lambda bi, ni: (bi, 0, ni)),
        compiler_params=pltpu.CompilerParams(
            dimension_semantics=("parallel", "parallel"),
            vmem_limit_bytes=32 * 1024 * 1024),
    )(xr, xr)

    return out.reshape((b, c) + spatial)


# --------------------------------- main ---------------------------------------
if __name__ == "__main__":
    key = jax.random.PRNGKey(0)
    k1, k2 = jax.random.split(key)

    # Primary case: NCHW feature map, B=2, 16 channels (8 + 8 split), 16x16.
    x = jax.random.normal(k1, (2, 16, 16, 16), dtype=jnp.float32)
    out = jax.block_until_ready(jax.jit(glu)(x))
    c = x.shape[1] // 2
    ref = x[:, :c] * jax.nn.sigmoid(x[:, c:])
    assert out.shape == ref.shape, (out.shape, ref.shape)
    assert jnp.all(jnp.isfinite(out))
    assert jnp.allclose(out, ref, atol=1e-5, rtol=1e-5)

    # Secondary case: forces a multi-tile spatial grid (TN=256 -> 4 tiles/row).
    x2 = jax.random.normal(k2, (2, 8, 32, 32), dtype=jnp.float32)
    out2 = jax.block_until_ready(jax.jit(functools.partial(glu, tile_n=256))(x2))
    c2 = x2.shape[1] // 2
    ref2 = x2[:, :c2] * jax.nn.sigmoid(x2[:, c2:])
    assert jnp.allclose(out2, ref2, atol=1e-5, rtol=1e-5)

    print("KERNEL_OK")
</pallas_src>

<mosaic_0001>
module attributes {stable_mosaic.version = 11 : i64} {
  func.func @_glu_kernel(%arg0: i32, %arg1: i32, %arg2: memref<1x1x8x256xf32, #tpu.memory_space<vmem>>, %arg3: memref<1x1x8x256xf32, #tpu.memory_space<vmem>>, %arg4: memref<1x8x256xf32, #tpu.memory_space<vmem>>) attributes {dimension_semantics = [#tpu.dimension_semantics<parallel>, #tpu.dimension_semantics<parallel>], iteration_bounds = array<i64: 2, 1>, scalar_prefetch = 0 : i64, scratch_operands = 0 : i64, tpu.core_type = #tpu.core_type<tc>, window_params = [{transform_indices = @transform_0, window_bounds = array<i64: 1, 1, 8, 256>}, {transform_indices = @transform_1, window_bounds = array<i64: 1, 1, 8, 256>}, {transform_indices = @transform_2, window_bounds = array<i64: 1, 8, 256>}]} {
    %c0 = arith.constant 0 : index
    %c0_0 = arith.constant 0 : index
    %c0_1 = arith.constant 0 : index
    %c0_2 = arith.constant 0 : index
    %0 = vector.load %arg2[%c0, %c0_0, %c0_1, %c0_2] : memref<1x1x8x256xf32, #tpu.memory_space<vmem>>, vector<1x1x8x256xf32>
    %1 = vector.shape_cast %0 : vector<1x1x8x256xf32> to vector<8x256xf32>
    %c0_3 = arith.constant 0 : index
    %c0_4 = arith.constant 0 : index
    %c0_5 = arith.constant 0 : index
    %c0_6 = arith.constant 0 : index
    %2 = vector.load %arg3[%c0_3, %c0_4, %c0_5, %c0_6] : memref<1x1x8x256xf32, #tpu.memory_space<vmem>>, vector<1x1x8x256xf32>
    %3 = vector.shape_cast %2 : vector<1x1x8x256xf32> to vector<8x256xf32>
    %4 = arith.negf %3 : vector<8x256xf32>
    %5 = math.exp %4 : vector<8x256xf32>
    %cst = arith.constant 1.000000e+00 : f32
    %6 = vector.broadcast %cst : f32 to vector<8x256xf32>
    %7 = arith.addf %6, %5 : vector<8x256xf32>
    %8 = arith.divf %6, %7 : vector<8x256xf32>
    %9 = arith.mulf %1, %8 : vector<8x256xf32>
    %c0_7 = arith.constant 0 : index
    %c0_8 = arith.constant 0 : index
    %c0_9 = arith.constant 0 : index
    %10 = vector.load %arg4[%c0_7, %c0_8, %c0_9] : memref<1x8x256xf32, #tpu.memory_space<vmem>>, vector<1x8x256xf32>
    %11 = vector.shape_cast %10 : vector<1x8x256xf32> to vector<8x256xf32>
    %12 = vector.shape_cast %9 : vector<8x256xf32> to vector<1x8x256xf32>
    tpu.vector_store %arg4[%c0_7, %c0_8, %c0_9], %12 {strides = array<i32>} : memref<1x8x256xf32, #tpu.memory_space<vmem>>, vector<1x8x256xf32>,
    return
  }
  func.func @transform_0(%arg0: i32, %arg1: i32) -> (i32, i32, i32, i32) {
    %c0_i32 = arith.constant 0 : i32
    %c0_i32_0 = arith.constant 0 : i32
    %c0_i32_1 = arith.constant 0 : i32
    return %arg0, %c0_i32, %c0_i32_0, %arg1 : i32, i32, i32, i32
  }
  func.func @transform_1(%arg0: i32, %arg1: i32) -> (i32, i32, i32, i32) {
    %c1_i32 = arith.constant 1 : i32
    %c0_i32 = arith.constant 0 : i32
    %c0_i32_0 = arith.constant 0 : i32
    return %arg0, %c1_i32, %c0_i32, %arg1 : i32, i32, i32, i32
  }
  func.func @transform_2(%arg0: i32, %arg1: i32) -> (i32, i32, i32) {
    %c0_i32 = arith.constant 0 : i32
    %c0_i32_0 = arith.constant 0 : i32
    return %arg0, %c0_i32, %arg1 : i32, i32, i32
  }
}

</mosaic_0001>

<bundles_post_ra>
// kernel: glu.1
= control target key start
LH: loop header
LB: loop body
LE: loop exit
PB: predicated region body
PF: predicated region fallthrough
CT: control target
= control target key end

     0   :  { %s441_s9 = smov 0   ;;  %s443_s10 = smov 0   ;;  %s477_s0 = inlined_call_operand.vmem [shape: f32[2,2,8,256], index: 0, kind: input, shape index: {}, may-alias: {0,1}]   ;;  %s478_s1 = inlined_call_operand.vmem [shape: f32[2,2,8,256], index: 1, kind: input, shape index: {}, may-alias: {0,1}]   ;;  %s479_s2 = inlined_call_operand.vmem [shape: f32[2,8,256], index: 2, kind: output, shape index: {}]  }
   0x1   :  { %s445_s11 = smov 0  }
   0x2 LB: > { %s24_s12 = sadd.s32 1, %s420_s10  ;;  %p354_p0 = scmp.ge.s32.totalorder %s424_s11, 1  ;;  %s424_s11 = sphi %s445_s11, %s12_s11   ;;  %s420_s10 = sphi %s443_s10, %s481_s10   ;;  %s416_s9 = sphi %s441_s9, %s480_s9  }
   0x3   : > { %p26_p1 = scmp.ge.s32.totalorder %s24_s12, 2  ;;  %p151_p2 = scmp.lt.s32.totalorder %s424_s11, 3 }
   0x5   : > { %s483_s12 = smov (%p26_p1, %s24_s12), 0  ;;  %p152_p3 = pnand %p354_p0, %p151_p2 }
   0x6   : > { %p192_p4 = scmp.lt.s32.totalorder (!%p152_p3), %s416_s9, 1 }
   0x7   : > { %155 = sbr.rel (%p152_p3) target bundleno = 48 (0x30), region = 28 }
   0xe   : > { %s485_s9 = smov (!%p192_p4, %s416_s9), 1 }
   0xf   : > { %s367_s13 = sshll.u32 %s485_s9, 5  ;;  %s369_s20 = sshll.u32 %s485_s9, 4 }
  0x10   : > { %s301_s16 = scalar_lea.vmem %s478_s1, %s367_s13  ;;  %s199_s19 = scalar_lea.vmem %s477_s0, %s367_s13 }
  0x11   : > { %v361_v0 = vld [vmem:[%s301_s16 + $0x10] sm:$0xff]  ;;  %v362_v1 = vld [vmem:[%s301_s16 + $0x18] sm:$0xff]  ;;  %v222_v8 = vld [vmem:[%s199_s19] sm:$0xff]  ;;  %s220_s23 = scalar_lea.vmem %s479_s2, %s369_s20 }
  0x12   : > { %v363_v2 = vmul.f32 -1.442695, %v361_v0  ;;  %v364_v3 = vmul.f32 -1.442695, %v362_v1  ;;  %v223_v9 = vld [vmem:[%s199_s19 + $0x8] sm:$0xff] }
  0x14   : > { %394 = vpow2.f32 %v363_v2 }
  0x15   : > { %396 = vpow2.f32 %v364_v3 }
  0x1e   : > { %v395_v4 = vpop.eup %394 }
  0x1f   : > { %v397_v5 = vpop.eup %396  ;;  %v232_v6 = vadd.f32 1.0, %v395_v4 }
  0x20   : > { %v233_v7 = vadd.f32 1.0, %v397_v5 }
  0x21   : > { %398 = vrcp.f32 %v232_v6 }
  0x22   : > { %400 = vrcp.f32 %v233_v7 }
  0x2b   : > { %v399_v10 = vpop.eup %398 }
  0x2c   : > { %v401_v11 = vpop.eup %400  ;;  %v238_v12 = vmul.f32 %v399_v10, %v222_v8 }
  0x2d   : > { %v239_v13 = vmul.f32 %v401_v11, %v223_v9 }
  0x2e   : > { %240 = vst [vmem:[%s220_s23] sm:$0xff] %v238_v12 }
  0x2f   : > { %241 = vst [vmem:[%s220_s23 + $0x8] sm:$0xff] %v239_v13 }
  0x30 PF: > { %s12_s11 = sadd.s32 1, %s424_s11   ;;  %s480_s9 = smov %s420_s10 }
  0x31   : > { %p9_p5 = scmp.ge.s32.totalorder %s12_s11, 4   ;;  %s481_s10 = smov %s483_s12 }
  0x33   :  { %11 = sbr.rel (!%p9_p5) target bundleno = 2 (0x2), region = 61 }

</bundles_post_ra>
